<compile_context>
chip_gen: v7x
topology: tpu7x:2x2x1
jax: 0.10.0
libtpu: 0.0.40
codegen_flags: <defaults>
</compile_context>

<pallas_src>
import jax
import jax.numpy as jnp
from jax.experimental import pallas as pl
from jax.experimental.pallas import tpu as pltpu

# ---------------- model dims (small, consistent with the module) ------------
B = 2            # batch
S = 8            # seq_len
H = 64           # hidden_size
G = 4            # interest_num (num_group_token)
N_ITEM = 256     # item_num
TXT = 384        # text feature dim (text_layer: Linear(384, 64))
LN_EPS = 1e-5    # target_norm / tokens_norm use torch LayerNorm default eps


def _layernorm(x, gamma, beta, eps=LN_EPS):
    mu = jnp.mean(x, axis=-1, keepdims=True)
    var = jnp.mean((x - mu) ** 2, axis=-1, keepdims=True)
    return (x - mu) * jax.lax.rsqrt(var + eps) * gamma + beta


def mmclus_kernel(ids_ref, tgt_ref, mask_ref, txt_seq_ref, txt_tgt_ref,
                  pack_ref, wtext_ref, wdim_ref, emb_ref,
                  fin_ref, scores_ref):
    emb = emb_ref[...]                                   # (N, H)

    # ---- packed small params: rows [0:G]=group_token, then b_text,
    #      b_text_dim, g_target, b_target, g_tokens, b_tokens ----
    pack = pack_ref[...]                                 # (G+6, H)
    gtok   = pack[0:G]                                   # (G, H)
    b_text = pack[G:G + 1]                               # (1, H)
    b_tdim = pack[G + 1:G + 2]
    g_tgt  = pack[G + 2:G + 3]
    b_tgt  = pack[G + 3:G + 4]
    g_tok  = pack[G + 4:G + 5]
    b_tok  = pack[G + 5:G + 6]

    mask = mask_ref[...]                                 # (B, S) f32

    # ---- embedding gather as one-hot MXU matmuls over the resident table ----
    ids = ids_ref[...]                                   # (B, S) int32
    iota_s = jax.lax.broadcasted_iota(jnp.int32, (B, S, N_ITEM), 2)
    onehot_s = (iota_s == ids[:, :, None]).astype(jnp.float32)      # (B, S, N)
    item_eb = jnp.einsum('bsn,nh->bsh', onehot_s, emb,
                         preferred_element_type=jnp.float32)        # (B, S, H)
    item_eb = item_eb * mask[:, :, None]                 # mask applied AFTER gather

    tgt = tgt_ref[...]                                   # (B, 1) int32
    iota_t = jax.lax.broadcasted_iota(jnp.int32, (B, N_ITEM), 1)
    onehot_t = (iota_t == tgt).astype(jnp.float32)       # (B, N)
    t = _layernorm(jnp.dot(onehot_t, emb, preferred_element_type=jnp.float32),
                   g_tgt, b_tgt)                         # (B, H) = target_norm(embed)

    # ---- text_layer (Linear 384 -> 64) for sequence rows and target row ----
    w_text = wtext_ref[...]                              # (TXT, H)
    txt_s = jnp.einsum('bst,th->bsh', txt_seq_ref[...], w_text,
                       preferred_element_type=jnp.float32) + b_text  # (B, S, H)
    txt_t = jnp.dot(txt_tgt_ref[...], w_text,
                    preferred_element_type=jnp.float32) + b_text     # (B, H)

    # ---- text_dim (Linear 128 -> 64): concat avoided via row-split weight ----
    w_top = wdim_ref[0:H, :]                             # half applied to item/target
    w_bot = wdim_ref[H:2 * H, :]                         # half applied to text proj
    x = (jnp.einsum('bsh,hk->bsk', item_eb, w_top, preferred_element_type=jnp.float32)
         + jnp.einsum('bsh,hk->bsk', txt_s, w_bot, preferred_element_type=jnp.float32)
         + b_tdim)                                       # (B, S, H)
    target_eb = (jnp.dot(t, w_top, preferred_element_type=jnp.float32)
                 + jnp.dot(txt_t, w_bot, preferred_element_type=jnp.float32)
                 + b_tdim)                               # (B, H)
    # add_pos=False -> item_emb_pos == x ; pass_type='no' -> tokens/x unchanged

    # TODO(synk): GroupingBlock source is not provided in the reference file; a
    # masked cross-attention assignment (group tokens attend over the sequence)
    # is used as the stand-in for `self.assignment(...)`.
    gt = jnp.broadcast_to(gtok[None], (B, G, H))
    logits = jnp.einsum('bgh,bsh->bgs', gt, x,
                        preferred_element_type=jnp.float32) * (1.0 / jnp.sqrt(jnp.float32(H)))
    logits = logits + (1.0 - mask)[:, None, :] * (-1e9)  # mask padded keys
    logits = logits - jnp.max(logits, axis=-1, keepdims=True)
    p = jnp.exp(logits)
    # approx reciprocal is safe here: the per-(b,g) scale error cancels in
    # tokens_norm below (up to the negligible eps term).
    attn = p * pl.reciprocal(jnp.sum(p, axis=-1, keepdims=True), approx=True)
    fin = jnp.einsum('bgs,bsh->bgh', attn, x,
                     preferred_element_type=jnp.float32)             # (B, G, H)

    # ---- tokens_norm; store as a (B*G, H) slab ----
    fin = _layernorm(fin, g_tok, b_tok)
    fin_ref[...] = fin.reshape(B * G, H)

    # ---- soft read_out (hard_readout=False); exact divide (not cancelled) ----
    atten = jnp.sum(fin * target_eb[:, None, :], axis=-1)            # (B, G)
    atten = atten - jnp.max(atten, axis=-1, keepdims=True)
    e = jnp.exp(atten)
    w = e / jnp.sum(e, axis=-1, keepdims=True)                       # (B, G)
    readout = jnp.sum(w[:, :, None] * fin, axis=1)                   # (B, H)

    # ---- calculate_score: readout @ emb^T with in-kernel transposed-RHS
    #      contraction (no wrapper-side emb.T / duplicate table stream) ----
    scores_ref[...] = jax.lax.dot_general(
        readout, emb, (((1,), (1,)), ((), ())),
        preferred_element_type=jnp.float32)                          # (B, N)


def mmclus_forward(params, input_ids, target_item, txt_ids, txt_item, mask):
    # No per-call concats / transposes: raw module inputs go straight in.
    in_arrays = (
        input_ids.astype(jnp.int32),                    # (B, S)
        target_item.astype(jnp.int32).reshape(B, 1),    # (B, 1) metadata-only reshape
        mask.astype(jnp.float32),                       # (B, S)
        txt_ids,                                        # (B, S, TXT)
        txt_item,                                       # (B, TXT)
        params["small_pack"],                           # (G+6, H) packed once at init
        params["w_text"],                               # (TXT, H)
        params["w_text_dim"],                           # (2H, H)
        params["emb"],                                  # (N, H)
    )

    vmem = pl.BlockSpec(memory_space=pltpu.MemorySpace.VMEM)
    fin_flat, scores = pl.pallas_call(
        mmclus_kernel,
        out_shape=(jax.ShapeDtypeStruct((B * G, H), jnp.float32),
                   jax.ShapeDtypeStruct((B, N_ITEM), jnp.float32)),
        in_specs=[vmem] * len(in_arrays),
        out_specs=(vmem, vmem),
    )(*in_arrays)
    return fin_flat.reshape(B, G, H), scores


# ------------------------- pure-JAX reference --------------------------------
def mmclus_reference(params, input_ids, target_item, txt_ids, txt_item, mask):
    emb = params["emb"]
    mask_f = mask.astype(jnp.float32)
    item_eb = emb[input_ids] * mask_f[:, :, None]
    t = _layernorm(emb[target_item], params["g_target"][0], params["b_target"][0])
    txt_i = txt_item @ params["w_text"] + params["b_text"][0]
    target_eb = jnp.concatenate([t, txt_i], -1) @ params["w_text_dim"] + params["b_text_dim"][0]
    txt_s = txt_ids @ params["w_text"] + params["b_text"][0]
    x = jnp.concatenate([item_eb, txt_s], -1) @ params["w_text_dim"] + params["b_text_dim"][0]
    gt = jnp.broadcast_to(params["group_token"], (input_ids.shape[0], G, H))
    logits = jnp.einsum("bgh,bsh->bgs", gt, x) / jnp.sqrt(jnp.float32(H))
    logits = logits + (1.0 - mask_f)[:, None, :] * (-1e9)
    attn = jax.nn.softmax(logits, axis=-1)
    fin = jnp.einsum("bgs,bsh->bgh", attn, x)
    fin = _layernorm(fin, params["g_tokens"][0], params["b_tokens"][0])
    atten = jax.nn.softmax(jnp.einsum("bgh,bh->bg", fin, target_eb), axis=-1)
    readout = jnp.einsum("bg,bgh->bh", atten, fin)
    scores = readout @ emb.T
    return fin, scores


# --------------------------------- main ---------------------------------------
if __name__ == "__main__":
    key = jax.random.PRNGKey(0)
    keys = jax.random.split(key, 12)

    emb = 0.02 * jax.random.normal(keys[0], (N_ITEM, H), jnp.float32)
    emb = emb.at[0].set(0.0)  # padding_idx=0

    params = {
        "emb": emb,
        "group_token": 0.02 * jax.random.normal(keys[1], (1, G, H), jnp.float32),
        "w_text": 0.02 * jax.random.normal(keys[2], (TXT, H), jnp.float32),        # text_layer.weight^T
        "b_text": 0.02 * jax.random.normal(keys[8], (1, H), jnp.float32),
        "w_text_dim": 0.02 * jax.random.normal(keys[3], (2 * H, H), jnp.float32),  # text_dim.weight^T
        "b_text_dim": 0.02 * jax.random.normal(keys[9], (1, H), jnp.float32),
        "g_target": 1.0 + 0.02 * jax.random.normal(keys[10], (1, H), jnp.float32),
        "b_target": 0.02 * jax.random.normal(keys[11], (1, H), jnp.float32),
        "g_tokens": jnp.ones((1, H), jnp.float32),
        "b_tokens": jnp.zeros((1, H), jnp.float32),
    }
    # Pack the seven tiny parameter tensors ONCE at init into a single slab so
    # the kernel receives one DMA stream instead of seven (perf feedback #3).
    params["small_pack"] = jnp.concatenate(
        [params["group_token"][0],        # rows 0..G-1
         params["b_text"], params["b_text_dim"],
         params["g_target"], params["b_target"],
         params["g_tokens"], params["b_tokens"]], axis=0)   # (G+6, H)

    input_ids = jax.random.randint(keys[4], (B, S), 1, N_ITEM, jnp.int32)
    target_item = jax.random.randint(keys[5], (B,), 1, N_ITEM, jnp.int32)
    txt_ids = jax.random.normal(keys[6], (B, S, TXT), jnp.float32)
    txt_item = jax.random.normal(keys[7], (B, TXT), jnp.float32)
    # padding mask: first few positions valid
    lens = jnp.array([6, 4], jnp.int32)
    mask = (jnp.arange(S)[None, :] < lens[:, None]).astype(jnp.float32)

    fin_group, scores = jax.block_until_ready(
        mmclus_forward(params, input_ids, target_item, txt_ids, txt_item, mask))

    fin_ref, scores_ref = mmclus_reference(
        params, input_ids, target_item, txt_ids, txt_item, mask)

    assert fin_group.shape == (B, G, H) and scores.shape == (B, N_ITEM)
    assert jnp.allclose(fin_group, fin_ref, rtol=1e-3, atol=1e-3)
    assert jnp.allclose(scores, scores_ref, rtol=1e-3, atol=1e-3)

    print("KERNEL_OK")
</pallas_src>

<mosaic_0001>
module attributes {stable_mosaic.version = 11 : i64} {
  func.func @mmclus_kernel(%arg0: memref<2x8xi32, #tpu.memory_space<vmem>>, %arg1: memref<2x1xi32, #tpu.memory_space<vmem>>, %arg2: memref<2x8xf32, #tpu.memory_space<vmem>>, %arg3: memref<2x8x384xf32, #tpu.memory_space<vmem>>, %arg4: memref<2x384xf32, #tpu.memory_space<vmem>>, %arg5: memref<10x64xf32, #tpu.memory_space<vmem>>, %arg6: memref<384x64xf32, #tpu.memory_space<vmem>>, %arg7: memref<128x64xf32, #tpu.memory_space<vmem>>, %arg8: memref<256x64xf32, #tpu.memory_space<vmem>>, %arg9: memref<8x64xf32, #tpu.memory_space<vmem>>, %arg10: memref<2x256xf32, #tpu.memory_space<vmem>>) attributes {dimension_semantics = [], scalar_prefetch = 0 : i64, scratch_operands = 0 : i64, tpu.core_type = #tpu.core_type<tc>} {
    %c0 = arith.constant 0 : index
    %c0_0 = arith.constant 0 : index
    %0 = vector.load %arg8[%c0, %c0_0] : memref<256x64xf32, #tpu.memory_space<vmem>>, vector<256x64xf32>
    %c0_1 = arith.constant 0 : index
    %c0_2 = arith.constant 0 : index
    %1 = vector.load %arg5[%c0_1, %c0_2] : memref<10x64xf32, #tpu.memory_space<vmem>>, vector<10x64xf32>
    %2 = vector.extract_strided_slice %1 {offsets = [0, 0], sizes = [4, 64], strides = [1, 1]} : vector<10x64xf32> to vector<4x64xf32>
    %3 = vector.extract_strided_slice %1 {offsets = [4, 0], sizes = [1, 64], strides = [1, 1]} : vector<10x64xf32> to vector<1x64xf32>
    %4 = vector.extract_strided_slice %1 {offsets = [5, 0], sizes = [1, 64], strides = [1, 1]} : vector<10x64xf32> to vector<1x64xf32>
    %5 = vector.extract_strided_slice %1 {offsets = [6, 0], sizes = [1, 64], strides = [1, 1]} : vector<10x64xf32> to vector<1x64xf32>
    %6 = vector.extract_strided_slice %1 {offsets = [7, 0], sizes = [1, 64], strides = [1, 1]} : vector<10x64xf32> to vector<1x64xf32>
    %7 = vector.extract_strided_slice %1 {offsets = [8, 0], sizes = [1, 64], strides = [1, 1]} : vector<10x64xf32> to vector<1x64xf32>
    %8 = vector.extract_strided_slice %1 {offsets = [9, 0], sizes = [1, 64], strides = [1, 1]} : vector<10x64xf32> to vector<1x64xf32>
    %c0_3 = arith.constant 0 : index
    %c0_4 = arith.constant 0 : index
    %9 = vector.load %arg2[%c0_3, %c0_4] : memref<2x8xf32, #tpu.memory_space<vmem>>, vector<2x8xf32>
    %c0_5 = arith.constant 0 : index
    %c0_6 = arith.constant 0 : index
    %10 = vector.load %arg0[%c0_5, %c0_6] : memref<2x8xi32, #tpu.memory_space<vmem>>, vector<2x8xi32>
    %11 = tpu.iota {dimensions = array<i32: 2>} : vector<2x8x256xi32>
    %12 = vector.shape_cast %10 : vector<2x8xi32> to vector<2x8x1xi32>
    %13 = vector.broadcast %12 : vector<2x8x1xi32> to vector<2x8x256xi32>
    %14 = arith.cmpi eq, %11, %13 : vector<2x8x256xi32>
    %15 = arith.extui %14 : vector<2x8x256xi1> to vector<2x8x256xi32>
    %16 = arith.sitofp %15 : vector<2x8x256xi32> to vector<2x8x256xf32>
    "tpu.trace_start"() <{level = 10 : i32, message = "bsn,nh->bsh"}> : () -> ()
    %cst = arith.constant dense<0.000000e+00> : vector<2x8x64xf32>
    %17 = tpu.matmul %16, %0, %cst {dimension_numbers = #tpu.dot_dimension_numbers<[2], [0], [0, 1], [1], [0, 0, 0, 1, 1, 1], [], []>} : vector<2x8x256xf32>, vector<256x64xf32>, vector<2x8x64xf32> -> vector<2x8x64xf32>
    "tpu.trace_stop"() : () -> ()
    %18 = vector.shape_cast %9 : vector<2x8xf32> to vector<2x8x1xf32>
    %19 = vector.broadcast %18 : vector<2x8x1xf32> to vector<2x8x64xf32>
    %20 = arith.mulf %17, %19 : vector<2x8x64xf32>
    %c0_7 = arith.constant 0 : index
    %c0_8 = arith.constant 0 : index
    %21 = vector.load %arg1[%c0_7, %c0_8] : memref<2x1xi32, #tpu.memory_space<vmem>>, vector<2x1xi32>
    %22 = tpu.iota {dimensions = array<i32: 1>} : vector<2x256xi32>
    %23 = vector.broadcast %21 : vector<2x1xi32> to vector<2x256xi32>
    %24 = arith.cmpi eq, %22, %23 : vector<2x256xi32>
    %25 = arith.extui %24 : vector<2x256xi1> to vector<2x256xi32>
    %26 = arith.sitofp %25 : vector<2x256xi32> to vector<2x256xf32>
    %cst_9 = arith.constant dense<0.000000e+00> : vector<2x64xf32>
    %27 = tpu.matmul %26, %0, %cst_9 {dimension_numbers = #tpu.dot_dimension_numbers<[1], [0], [0], [1], [0, 0, 1, 1], [], []>} : vector<2x256xf32>, vector<256x64xf32>, vector<2x64xf32> -> vector<2x64xf32>
    %cst_10 = arith.constant dense<0.000000e+00> : vector<2xf32>
    %28 = vector.multi_reduction <add>, %27, %cst_10 [1] : vector<2x64xf32> to vector<2xf32>
    %29 = vector.shape_cast %28 : vector<2xf32> to vector<2x1xf32>
    %cst_11 = arith.constant 6.400000e+01 : f32
    %30 = vector.broadcast %cst_11 : f32 to vector<2x1xf32>
    %31 = arith.divf %29, %30 : vector<2x1xf32>
    %32 = vector.broadcast %31 : vector<2x1xf32> to vector<2x64xf32>
    %33 = arith.subf %27, %32 : vector<2x64xf32>
    %34 = arith.mulf %33, %33 : vector<2x64xf32>
    %cst_12 = arith.constant dense<0.000000e+00> : vector<2xf32>
    %35 = vector.multi_reduction <add>, %34, %cst_12 [1] : vector<2x64xf32> to vector<2xf32>
    %36 = vector.shape_cast %35 : vector<2xf32> to vector<2x1xf32>
    %cst_13 = arith.constant 6.400000e+01 : f32
    %37 = vector.broadcast %cst_13 : f32 to vector<2x1xf32>
    %38 = arith.divf %36, %37 : vector<2x1xf32>
    %39 = vector.broadcast %31 : vector<2x1xf32> to vector<2x64xf32>
    %40 = arith.subf %27, %39 : vector<2x64xf32>
    %cst_14 = arith.constant 9.99999974E-6 : f32
    %41 = vector.broadcast %cst_14 : f32 to vector<2x1xf32>
    %42 = arith.addf %38, %41 : vector<2x1xf32>
    %43 = math.rsqrt %42 : vector<2x1xf32>
    %44 = vector.broadcast %43 : vector<2x1xf32> to vector<2x64xf32>
    %45 = arith.mulf %40, %44 : vector<2x64xf32>
    %46 = vector.broadcast %5 : vector<1x64xf32> to vector<2x64xf32>
    %47 = arith.mulf %45, %46 : vector<2x64xf32>
    %48 = vector.broadcast %6 : vector<1x64xf32> to vector<2x64xf32>
    %49 = arith.addf %47, %48 : vector<2x64xf32>
    %c0_15 = arith.constant 0 : index
    %c0_16 = arith.constant 0 : index
    %50 = vector.load %arg6[%c0_15, %c0_16] : memref<384x64xf32, #tpu.memory_space<vmem>>, vector<384x64xf32>
    %c0_17 = arith.constant 0 : index
    %c0_18 = arith.constant 0 : index
    %c0_19 = arith.constant 0 : index
    %51 = vector.load %arg3[%c0_17, %c0_18, %c0_19] : memref<2x8x384xf32, #tpu.memory_space<vmem>>, vector<2x8x384xf32>
    "tpu.trace_start"() <{level = 10 : i32, message = "bst,th->bsh"}> : () -> ()
    %cst_20 = arith.constant dense<0.000000e+00> : vector<2x8x64xf32>
    %52 = tpu.matmul %51, %50, %cst_20 {dimension_numbers = #tpu.dot_dimension_numbers<[2], [0], [0, 1], [1], [0, 0, 0, 1, 1, 1], [], []>} : vector<2x8x384xf32>, vector<384x64xf32>, vector<2x8x64xf32> -> vector<2x8x64xf32>
    "tpu.trace_stop"() : () -> ()
    %53 = vector.shape_cast %3 : vector<1x64xf32> to vector<1x1x64xf32>
    %54 = vector.broadcast %53 : vector<1x1x64xf32> to vector<2x8x64xf32>
    %55 = arith.addf %52, %54 : vector<2x8x64xf32>
    %c0_21 = arith.constant 0 : index
    %c0_22 = arith.constant 0 : index
    %56 = vector.load %arg4[%c0_21, %c0_22] : memref<2x384xf32, #tpu.memory_space<vmem>>, vector<2x384xf32>
    %cst_23 = arith.constant dense<0.000000e+00> : vector<2x64xf32>
    %57 = tpu.matmul %56, %50, %cst_23 {dimension_numbers = #tpu.dot_dimension_numbers<[1], [0], [0], [1], [0, 0, 1, 1], [], []>} : vector<2x384xf32>, vector<384x64xf32>, vector<2x64xf32> -> vector<2x64xf32>
    %58 = vector.broadcast %3 : vector<1x64xf32> to vector<2x64xf32>
    %59 = arith.addf %57, %58 : vector<2x64xf32>
    %c0_24 = arith.constant 0 : index
    %c0_25 = arith.constant 0 : index
    %60 = vector.load %arg7[%c0_24, %c0_25] : memref<128x64xf32, #tpu.memory_space<vmem>>, vector<64x64xf32>
    %c64 = arith.constant 64 : index
    %c0_26 = arith.constant 0 : index
    %61 = vector.load %arg7[%c64, %c0_26] : memref<128x64xf32, #tpu.memory_space<vmem>>, vector<64x64xf32>
    "tpu.trace_start"() <{level = 10 : i32, message = "bsh,hk->bsk"}> : () -> ()
    %cst_27 = arith.constant dense<0.000000e+00> : vector<2x8x64xf32>
    %62 = tpu.matmul %20, %60, %cst_27 {dimension_numbers = #tpu.dot_dimension_numbers<[2], [0], [0, 1], [1], [0, 0, 0, 1, 1, 1], [], []>} : vector<2x8x64xf32>, vector<64x64xf32>, vector<2x8x64xf32> -> vector<2x8x64xf32>
    %cst_28 = arith.constant dense<0.000000e+00> : vector<2x8x64xf32>
    %63 = tpu.matmul %55, %61, %cst_28 {dimension_numbers = #tpu.dot_dimension_numbers<[2], [0], [0, 1], [1], [0, 0, 0, 1, 1, 1], [], []>} : vector<2x8x64xf32>, vector<64x64xf32>, vector<2x8x64xf32> -> vector<2x8x64xf32>
    "tpu.trace_stop"() : () -> ()
    %64 = arith.addf %62, %63 : vector<2x8x64xf32>
    %65 = vector.shape_cast %4 : vector<1x64xf32> to vector<1x1x64xf32>
    %66 = vector.broadcast %65 : vector<1x1x64xf32> to vector<2x8x64xf32>
    %67 = arith.addf %64, %66 : vector<2x8x64xf32>
    %cst_29 = arith.constant dense<0.000000e+00> : vector<2x64xf32>
    %68 = tpu.matmul %49, %60, %cst_29 {dimension_numbers = #tpu.dot_dimension_numbers<[1], [0], [0], [1], [0, 0, 1, 1], [], []>} : vector<2x64xf32>, vector<64x64xf32>, vector<2x64xf32> -> vector<2x64xf32>
    %cst_30 = arith.constant dense<0.000000e+00> : vector<2x64xf32>
    %69 = tpu.matmul %59, %61, %cst_30 {dimension_numbers = #tpu.dot_dimension_numbers<[1], [0], [0], [1], [0, 0, 1, 1], [], []>} : vector<2x64xf32>, vector<64x64xf32>, vector<2x64xf32> -> vector<2x64xf32>
    %70 = arith.addf %68, %69 : vector<2x64xf32>
    %71 = vector.broadcast %4 : vector<1x64xf32> to vector<2x64xf32>
    %72 = arith.addf %70, %71 : vector<2x64xf32>
    %73 = vector.shape_cast %2 : vector<4x64xf32> to vector<1x4x64xf32>
    %74 = vector.shape_cast %73 : vector<1x4x64xf32> to vector<1x4x64xf32>
    %75 = vector.broadcast %74 : vector<1x4x64xf32> to vector<2x4x64xf32>
    "tpu.trace_start"() <{level = 10 : i32, message = "bgh,bsh->bgs"}> : () -> ()
    %cst_31 = arith.constant dense<0.000000e+00> : vector<2x4x8xf32>
    %76 = tpu.matmul %75, %67, %cst_31 {dimension_numbers = #tpu.dot_dimension_numbers<[2], [2], [1], [1], [0, 0, 0, 1, 1, 1], [0], [0]>} : vector<2x4x64xf32>, vector<2x8x64xf32>, vector<2x4x8xf32> -> vector<2x4x8xf32>
    %cst_32 = arith.constant 6.400000e+01 : f32
    "tpu.trace_stop"() : () -> ()
    %77 = math.sqrt %cst_32 : f32
    %cst_33 = arith.constant 1.000000e+00 : f32
    %78 = arith.divf %cst_33, %77 : f32
    %79 = vector.broadcast %78 : f32 to vector<2x4x8xf32>
    %80 = arith.mulf %76, %79 : vector<2x4x8xf32>
    %cst_34 = arith.constant 1.000000e+00 : f32
    %81 = vector.broadcast %cst_34 : f32 to vector<2x8xf32>
    %82 = arith.subf %81, %9 : vector<2x8xf32>
    %83 = vector.shape_cast %82 : vector<2x8xf32> to vector<2x1x8xf32>
    %cst_35 = arith.constant -1.000000e+09 : f32
    %84 = vector.broadcast %cst_35 : f32 to vector<2x1x8xf32>
    %85 = arith.mulf %83, %84 : vector<2x1x8xf32>
    %86 = vector.broadcast %85 : vector<2x1x8xf32> to vector<2x4x8xf32>
    %87 = arith.addf %80, %86 : vector<2x4x8xf32>
    %cst_36 = arith.constant dense<0xFF800000> : vector<2x4xf32>
    %88 = vector.multi_reduction <maximumf>, %87, %cst_36 [2] : vector<2x4x8xf32> to vector<2x4xf32>
    %89 = vector.shape_cast %88 : vector<2x4xf32> to vector<2x4x1xf32>
    %90 = vector.broadcast %89 : vector<2x4x1xf32> to vector<2x4x8xf32>
    %91 = arith.subf %87, %90 : vector<2x4x8xf32>
    %92 = math.exp %91 : vector<2x4x8xf32>
    %cst_37 = arith.constant dense<0.000000e+00> : vector<2x4xf32>
    %93 = vector.multi_reduction <add>, %92, %cst_37 [2] : vector<2x4x8xf32> to vector<2x4xf32>
    %94 = vector.shape_cast %93 : vector<2x4xf32> to vector<2x4x1xf32>
    %95 = tpu.reciprocal %94 {approx = true} : vector<2x4x1xf32> -> vector<2x4x1xf32>
    %96 = vector.broadcast %95 : vector<2x4x1xf32> to vector<2x4x8xf32>
    %97 = arith.mulf %92, %96 : vector<2x4x8xf32>
    "tpu.trace_start"() <{level = 10 : i32, message = "bgs,bsh->bgh"}> : () -> ()
    %cst_38 = arith.constant dense<0.000000e+00> : vector<2x4x64xf32>
    %98 = tpu.matmul %97, %67, %cst_38 {dimension_numbers = #tpu.dot_dimension_numbers<[2], [1], [1], [2], [0, 0, 0, 1, 1, 2], [0], [0]>} : vector<2x4x8xf32>, vector<2x8x64xf32>, vector<2x4x64xf32> -> vector<2x4x64xf32>
    "tpu.trace_stop"() : () -> ()
    %cst_39 = arith.constant dense<0.000000e+00> : vector<2x4xf32>
    %99 = vector.multi_reduction <add>, %98, %cst_39 [2] : vector<2x4x64xf32> to vector<2x4xf32>
    %100 = vector.shape_cast %99 : vector<2x4xf32> to vector<2x4x1xf32>
    %cst_40 = arith.constant 6.400000e+01 : f32
    %101 = vector.broadcast %cst_40 : f32 to vector<2x4x1xf32>
    %102 = arith.divf %100, %101 : vector<2x4x1xf32>
    %103 = vector.broadcast %102 : vector<2x4x1xf32> to vector<2x4x64xf32>
    %104 = arith.subf %98, %103 : vector<2x4x64xf32>
    %105 = arith.mulf %104, %104 : vector<2x4x64xf32>
    %cst_41 = arith.constant dense<0.000000e+00> : vector<2x4xf32>
    %106 = vector.multi_reduction <add>, %105, %cst_41 [2] : vector<2x4x64xf32> to vector<2x4xf32>
    %107 = vector.shape_cast %106 : vector<2x4xf32> to vector<2x4x1xf32>
    %cst_42 = arith.constant 6.400000e+01 : f32
    %108 = vector.broadcast %cst_42 : f32 to vector<2x4x1xf32>
    %109 = arith.divf %107, %108 : vector<2x4x1xf32>
    %110 = vector.broadcast %102 : vector<2x4x1xf32> to vector<2x4x64xf32>
    %111 = arith.subf %98, %110 : vector<2x4x64xf32>
    %cst_43 = arith.constant 9.99999974E-6 : f32
    %112 = vector.broadcast %cst_43 : f32 to vector<2x4x1xf32>
    %113 = arith.addf %109, %112 : vector<2x4x1xf32>
    %114 = math.rsqrt %113 : vector<2x4x1xf32>
    %115 = vector.broadcast %114 : vector<2x4x1xf32> to vector<2x4x64xf32>
    %116 = arith.mulf %111, %115 : vector<2x4x64xf32>
    %117 = vector.shape_cast %7 : vector<1x64xf32> to vector<1x1x64xf32>
    %118 = vector.broadcast %117 : vector<1x1x64xf32> to vector<2x4x64xf32>
    %119 = arith.mulf %116, %118 : vector<2x4x64xf32>
    %120 = vector.shape_cast %8 : vector<1x64xf32> to vector<1x1x64xf32>
    %121 = vector.broadcast %120 : vector<1x1x64xf32> to vector<2x4x64xf32>
    %122 = arith.addf %119, %121 : vector<2x4x64xf32>
    %123 = vector.shape_cast %122 : vector<2x4x64xf32> to vector<8x64xf32>
    %c0_44 = arith.constant 0 : index
    %c0_45 = arith.constant 0 : index
    %124 = vector.load %arg9[%c0_44, %c0_45] : memref<8x64xf32, #tpu.memory_space<vmem>>, vector<8x64xf32>
    tpu.vector_store %arg9[%c0_44, %c0_45], %123 {strides = array<i32>} : memref<8x64xf32, #tpu.memory_space<vmem>>, vector<8x64xf32>,
    %125 = vector.shape_cast %72 : vector<2x64xf32> to vector<2x1x64xf32>
    %126 = vector.broadcast %125 : vector<2x1x64xf32> to vector<2x4x64xf32>
    %127 = arith.mulf %122, %126 : vector<2x4x64xf32>
    %cst_46 = arith.constant dense<0.000000e+00> : vector<2x4xf32>
    %128 = vector.multi_reduction <add>, %127, %cst_46 [2] : vector<2x4x64xf32> to vector<2x4xf32>
    %cst_47 = arith.constant dense<0xFF800000> : vector<2xf32>
    %129 = vector.multi_reduction <maximumf>, %128, %cst_47 [1] : vector<2x4xf32> to vector<2xf32>
    %130 = vector.shape_cast %129 : vector<2xf32> to vector<2x1xf32>
    %131 = vector.broadcast %130 : vector<2x1xf32> to vector<2x4xf32>
    %132 = arith.subf %128, %131 : vector<2x4xf32>
    %133 = math.exp %132 : vector<2x4xf32>
    %cst_48 = arith.constant dense<0.000000e+00> : vector<2xf32>
    %134 = vector.multi_reduction <add>, %133, %cst_48 [1] : vector<2x4xf32> to vector<2xf32>
    %135 = vector.shape_cast %134 : vector<2xf32> to vector<2x1xf32>
    %136 = vector.broadcast %135 : vector<2x1xf32> to vector<2x4xf32>
    %137 = arith.divf %133, %136 : vector<2x4xf32>
    %138 = vector.shape_cast %137 : vector<2x4xf32> to vector<2x4x1xf32>
    %139 = vector.broadcast %138 : vector<2x4x1xf32> to vector<2x4x64xf32>
    %140 = arith.mulf %139, %122 : vector<2x4x64xf32>
    %cst_49 = arith.constant dense<0.000000e+00> : vector<2x64xf32>
    %141 = vector.multi_reduction <add>, %140, %cst_49 [1] : vector<2x4x64xf32> to vector<2x64xf32>
    %cst_50 = arith.constant dense<0.000000e+00> : vector<2x256xf32>
    %142 = tpu.matmul %141, %0, %cst_50 {dimension_numbers = #tpu.dot_dimension_numbers<[1], [1], [0], [0], [0, 0, 1, 0], [], []>} : vector<2x64xf32>, vector<256x64xf32>, vector<2x256xf32> -> vector<2x256xf32>
    %c0_51 = arith.constant 0 : index
    %c0_52 = arith.constant 0 : index
    %143 = vector.load %arg10[%c0_51, %c0_52] : memref<2x256xf32, #tpu.memory_space<vmem>>, vector<2x256xf32>
    tpu.vector_store %arg10[%c0_51, %c0_52], %142 {strides = array<i32>} : memref<2x256xf32, #tpu.memory_space<vmem>>, vector<2x256xf32>,
    return
  }
}

</mosaic_0001>

<bundles_post_ra>
// kernel: tpu_custom_call.1
= control target key start
LH: loop header
LB: loop body
LE: loop exit
PB: predicated region body
PF: predicated region fallthrough
CT: control target
= control target key end

     0   :  { %16 = vsyncpa [#allocation3], 0  ;;  %v72_v0 = vlaneseq  ;;  %v2611_v3 = vmov 0   ;;  %s3342_s0 = inlined_call_operand.vmem [shape: s32[2,8], index: 0, kind: input, shape index: {}]   ;;  %s3343_s1 = inlined_call_operand.vmem [shape: s32[2,1], index: 1, kind: input, shape index: {}]   ;;  %s3344_s2 = inlined_call_operand.vmem [shape: f32[2,8], index: 2, kind: input, shape index: {}]   ;;  %s3345_s3 = inlined_call_operand.vmem [shape: f32[2,8,384], index: 3, kind: input, shape index: {}]   ;;  %s3346_s4 = inlined_call_operand.vmem [shape: f32[2,384], index: 4, kind: input, shape index: {}]   ;;  %s3347_s5 = inlined_call_operand.vmem [shape: f32[10,64], index: 5, kind: input, shape index: {}]   ;;  %s3348_s6 = inlined_call_operand.vmem [shape: f32[384,64], index: 6, kind: input, shape index: {}]   ;;  %s3349_s7 = inlined_call_operand.vmem [shape: f32[128,64], index: 7, kind: input, shape index: {}]   ;;  %s3350_s8 = inlined_call_operand.vmem [shape: f32[256,64], index: 8, kind: input, shape index: {}]   ;;  %s3351_s9 = inlined_call_operand.hbm [shape: f32[8,64], index: 9, kind: output, shape index: {0}]   ;;  %s3352_s10 = inlined_call_operand.hbm [shape: f32[2,256], index: 10, kind: output, shape index: {1}]  }
   0x1   :  { %v52_v1 = vld [vmem:[%s3350_s8 + $0x80] sm:$0xff]  ;;  %2538 = vset.pattern.permute.xlu0 %v2611_v3  ;;  %v53_v4 = vld [vmem:[%s3350_s8 + $0x88] sm:$0xff]  ;;  %2539 = vset.pattern.permute.xlu1 %v2611_v3  ;;  %v54_v10 = vld [vmem:[%s3350_s8 + $0x90] sm:$0xff] }
   0x2   :  { %v71_v2 = vld [vmem:[%s3342_s0] sm:$0x3]  ;;  %v37_v6 = vld [vmem:[%s3350_s8 + $0x8] sm:$0xff]  ;;  %v2691_v7 = vshrl.u32 %v72_v0, 7  ;;  %v2693_v8 = vpack.c.bf16 %v53_v4, %v52_v1  ;;  %v55_v11 = vld [vmem:[%s3350_s8 + $0x98] sm:$0xff] }
   0x3   :  { %v36_v5 = vld [vmem:[%s3350_s8] sm:$0xff]  ;;  %v38_v12 = vld [vmem:[%s3350_s8 + $0x10] sm:$0xff]  ;;  %v2706_v13 = vpack.c.bf16 %v55_v11, %v54_v10  ;;  %v39_v14 = vld [vmem:[%s3350_s8 + $0x18] sm:$0xff] }
   0x4   :  { %v2695_v9 = vpack.c.bf16 %v37_v6, %v36_v5  ;;  %v56_v15 = vld [vmem:[%s3350_s8 + $0xa0] sm:$0xff]  ;;  %v57_v16 = vld [vmem:[%s3350_s8 + $0xa8] sm:$0xff]  ;;  %v2718_v17 = vsub.s32 0, %v2691_v7  ;;  %v2721_v18 = vsub.s32 1, %v2691_v7  ;;  %2240 = vmatprep.subr.bf16.mxu1 %v2693_v8  ;;  %v2725_v19 = vpack.c.bf16 %v39_v14, %v38_v12  ;;  %v58_v25 = vld [vmem:[%s3350_s8 + $0xb0] sm:$0xff] }
   0x5   :  { %v2730_v22 = vpack.c.bf16 %v57_v16, %v56_v15  ;;  %v40_v23 = vld [vmem:[%s3350_s8 + $0x20] sm:$0xff]  ;;  %v41_v24 = vld [vmem:[%s3350_s8 + $0x28] sm:$0xff]  ;;  %v59_v26 = vld [vmem:[%s3350_s8 + $0xb8] sm:$0xff] }
   0x6   :  { %2242 = vmatpush3.bf16.msra.mxu1 %v2695_v9  ;;  %v78_v20 = vrot.slane %v71_v2, %v2718_v17  ;;  %v85_v21 = vrot.slane %v71_v2, %v2721_v18  ;;  %v192_v27 = vld [vmem:[%s3343_s1] sm:$0x3]  ;;  %v2748_v28 = vpack.c.bf16 %v41_v24, %v40_v23  ;;  %v2751_v29 = vpack.c.bf16 %v59_v26, %v58_v25  ;;  %v42_v30 = vld [vmem:[%s3350_s8 + $0x30] sm:$0xff]  ;;  %v43_v31 = vld [vmem:[%s3350_s8 + $0x38] sm:$0xff] }
   0x7   :  { %2244 = vmatprep.subr.bf16.mxu1 %v2706_v13  ;;  %v60_v32 = vld [vmem:[%s3350_s8 + $0xc0] sm:$0xff]  ;;  %v61_v33 = vld [vmem:[%s3350_s8 + $0xc8] sm:$0xff] }
   0x8   :  { %80 = vbcast.lane.b32.xlu0 %v78_v20, 256  ;;  %87 = vbcast.lane.b32.xlu1 %v85_v21, 256 }
   0xa   :  { %2246 = vmatpush3.bf16.msra.mxu1 %v2725_v19 }
   0xb   :  { %2248 = vmatprep.subr.bf16.mxu1 %v2730_v22 }
   0xc   :  { %17 = vsyncpa [#allocation5], 0  ;;  %194 = vperm.xlu0 %2538, %v192_v27   ;;  %v2766_v34 = vpack.c.bf16 %v43_v31, %v42_v30  ;;  %v2769_v35 = vpack.c.bf16 %v61_v33, %v60_v32  ;;  %v44_v36 = vld [vmem:[%s3350_s8 + $0x40] sm:$0xff]  ;;  %v45_v37 = vld [vmem:[%s3350_s8 + $0x48] sm:$0xff]  ;;  %vm2615_vm6 = vmmov 0   ;;  %vm272_vm7 = vcmask 517120  }
   0xd   :  { %v62_v38 = vld [vmem:[%s3350_s8 + $0xd0] sm:$0xff]  ;;  %v63_v39 = vld [vmem:[%s3350_s8 + $0xd8] sm:$0xff]  ;;  %v2784_v40 = vpack.c.bf16 %v45_v37, %v44_v36  ;;  %v64_v44 = vld [vmem:[%s3350_s8 + $0xe0] sm:$0xff]  ;;  %vm682_vm8 = vcmask 523264   ;;  %vm1191_vm9 = vcmask 60416   ;;  %vm1214_vm10 = vcmask 64512  }
   0xe   :  { %2250 = vmatpush3.bf16.msra.mxu1 %v2748_v28  ;;  %v2787_v41 = vpack.c.bf16 %v63_v39, %v62_v38  ;;  %v46_v42 = vld [vmem:[%s3350_s8 + $0x50] sm:$0xff]  ;;  %v47_v43 = vld [vmem:[%s3350_s8 + $0x58] sm:$0xff]  ;;  %v65_v45 = vld [vmem:[%s3350_s8 + $0xe8] sm:$0xff]  ;;  %vm1361_vm11 = vcmask 519168   ;;  %vm1456_vm12 = vcmask 1041409   ;;  %vm1459_vm13 = vcmask 25600  }
   0xf   :  { %2252 = vmatprep.subr.bf16.mxu1 %v2751_v29  ;;  %v313_v46 = vld [vmem:[%s3348_s6 + $0x80] sm:$0xff]  ;;  %v314_v47 = vld [vmem:[%s3348_s6 + $0x88] sm:$0xff]  ;;  %v2816_v51 = vpack.c.bf16 %v47_v43, %v46_v42  ;;  %v2821_v53 = vpack.c.bf16 %v65_v45, %v64_v44  ;;  %v66_v56 = vld [vmem:[%s3350_s8 + $0xf0] sm:$0xff] }
  0x10   :  { %v2807_v48 = vpack.c.bf16 %v314_v47, %v313_v46  ;;  %v297_v49 = vld [vmem:[%s3348_s6] sm:$0xff]  ;;  %v298_v50 = vld [vmem:[%s3348_s6 + $0x8] sm:$0xff]  ;;  %v67_v57 = vld [vmem:[%s3350_s8 + $0xf8] sm:$0xff] }
  0x11   :  { %v2818_v52 = vpack.c.bf16 %v298_v50, %v297_v49  ;;  %v48_v54 = vld [vmem:[%s3350_s8 + $0x60] sm:$0xff]  ;;  %v49_v55 = vld [vmem:[%s3350_s8 + $0x68] sm:$0xff]  ;;  %v315_v58 = vld [vmem:[%s3348_s6 + $0x90] sm:$0xff]  ;;  %v2857_v2 = vpack.c.bf16 %v67_v57, %v66_v56 }
  0x12   :  { %2254 = vmatpush3.bf16.msra.mxu1 %v2766_v34  ;;  %2304 = vmatprep.subr.bf16.mxu0 %v2807_v48  ;;  %v316_v59 = vld [vmem:[%s3348_s6 + $0x98] sm:$0xff]  ;;  %v299_v61 = vld [vmem:[%s3348_s6 + $0x10] sm:$0xff]  ;;  %v2852_v63 = vpack.c.bf16 %v49_v55, %v48_v54  ;;  %v317_v5 = vld [vmem:[%s3348_s6 + $0xa0] sm:$0xff] }
  0x13   :  { %2256 = vmatprep.subr.bf16.mxu1 %v2769_v35  ;;  %2306 = vmatpush3.bf16.msra.mxu0 %v2818_v52  ;;  %v2843_v60 = vpack.c.bf16 %v316_v59, %v315_v58  ;;  %v300_v62 = vld [vmem:[%s3348_s6 + $0x18] sm:$0xff]  ;;  %v50_v3 = vld [vmem:[%s3350_s8 + $0x70] sm:$0xff]  ;;  %v318_v6 = vld [vmem:[%s3348_s6 + $0xa8] sm:$0xff] }
  0x14   :  { %v2854_v1 = vpack.c.bf16 %v300_v62, %v299_v61  ;;  %v51_v4 = vld [vmem:[%s3350_s8 + $0x78] sm:$0xff]  ;;  %v2311_v10 = vpack.c.bf16 %v318_v6, %v317_v5  ;;  %v301_v11 = vld [vmem:[%s3348_s6 + $0x20] sm:$0xff]  ;;  %v302_v12 = vld [vmem:[%s3348_s6 + $0x28] sm:$0xff] }
  0x15   :  { %2308 = vmatprep.subr.bf16.mxu0 %v2843_v60  ;;  %v2880_v14 = vpack.c.bf16 %v51_v4, %v50_v3  ;;  %v2313_v15 = vpack.c.bf16 %v302_v12, %v301_v11  ;;  %v319_v16 = vld [vmem:[%s3348_s6 + $0xb0] sm:$0xff]  ;;  %v320_v20 = vld [vmem:[%s3348_s6 + $0xb8] sm:$0xff]  ;;  %v321_v26 = vld [vmem:[%s3348_s6 + $0xc0] sm:$0xff]  ;;  %v2612_v11 = vmov 1.0  }
  0x16   :  { %2258 = vmatpush3.bf16.msra.mxu1 %v2784_v40  ;;  %v2315_v21 = vpack.c.bf16 %v320_v20, %v319_v16  ;;  %v303_v23 = vld [vmem:[%s3348_s6 + $0x30] sm:$0xff]  ;;  %v304_v24 = vld [vmem:[%s3348_s6 + $0x38] sm:$0xff]  ;;  %v322_v27 = vld [vmem:[%s3348_s6 + $0xc8] sm:$0xff] }
  0x17   :  { %2260 = vmatprep.subr.bf16.mxu1 %v2787_v41  ;;  %2310 = vmatpush3.bf16.msra.mxu0 %v2854_v1  ;;  %v2317_v25 = vpack.c.bf16 %v304_v24, %v303_v23  ;;  %v2319_v30 = vpack.c.bf16 %v322_v27, %v321_v26  ;;  %v305_v31 = vld [vmem:[%s3348_s6 + $0x40] sm:$0xff]  ;;  %v306_v32 = vld [vmem:[%s3348_s6 + $0x48] sm:$0xff]  ;;  %v323_v36 = vld [vmem:[%s3348_s6 + $0xd0] sm:$0xff] }
  0x18   :  { %2312 = vmatprep.subr.bf16.mxu0 %v2311_v10  ;;  %v2321_v33 = vpack.c.bf16 %v306_v32, %v305_v31  ;;  %v324_v37 = vld [vmem:[%s3348_s6 + $0xd8] sm:$0xff]  ;;  %v307_v39 = vld [vmem:[%s3348_s6 + $0x50] sm:$0xff]  ;;  %v325_v44 = vld [vmem:[%s3348_s6 + $0xe0] sm:$0xff] }
  0x19   :  { %v2323_v38 = vpack.c.bf16 %v324_v37, %v323_v36  ;;  %v308_v42 = vld [vmem:[%s3348_s6 + $0x58] sm:$0xff]  ;;  %v326_v45 = vld [vmem:[%s3348_s6 + $0xe8] sm:$0xff]  ;;  %v309_v47 = vld [vmem:[%s3348_s6 + $0x60] sm:$0xff] }
  0x1a   :  { %2262 = vmatpush3.bf16.msra.mxu1 %v2816_v51  ;;  %v2325_v43 = vpack.c.bf16 %v308_v42, %v307_v39  ;;  %v2327_v46 = vpack.c.bf16 %v326_v45, %v325_v44  ;;  %v310_v49 = vld [vmem:[%s3348_s6 + $0x68] sm:$0xff]  ;;  %v327_v54 = vld [vmem:[%s3348_s6 + $0xf0] sm:$0xff]  ;;  %v328_v55 = vld [vmem:[%s3348_s6 + $0xf8] sm:$0xff] }
  0x1b   :  { %2264 = vmatprep.subr.bf16.mxu1 %v2821_v53  ;;  %2314 = vmatpush3.bf16.msra.mxu0 %v2313_v15  ;;  %v2329_v50 = vpack.c.bf16 %v310_v49, %v309_v47  ;;  %v2331_v56 = vpack.c.bf16 %v328_v55, %v327_v54  ;;  %v311_v57 = vld [vmem:[%s3348_s6 + $0x70] sm:$0xff]  ;;  %v312_v58 = vld [vmem:[%s3348_s6 + $0x78] sm:$0xff]  ;;  %v346_v61 = vld [vmem:[%s3345_s3 + $0x8] sm:$0xff] }
  0x1c   :  { %2316 = vmatprep.subr.bf16.mxu0 %v2315_v21  ;;  %v2333_v59 = vpack.c.bf16 %v312_v58, %v311_v57  ;;  %419 = vmatprep.mubr.f32.mxu0 %v346_v61  ;;  %v345_v62 = vld [vmem:[%s3345_s3] sm:$0xff]  ;;  %v348_v4 = vld [vmem:[%s3345_s3 + $0x18] sm:$0xff]  ;;  %v331_v20 = vld [vmem:[%s3348_s6 + $0x110] sm:$0xff] }
  0x1d   :  { %v349_v3 = vld [vmem:[%s3345_s3 + $0x20] sm:$0xff]  ;;  %v347_v24 = vld [vmem:[%s3345_s3 + $0x10] sm:$0xff]  ;;  %v334_v26 = vld [vmem:[%s3348_s6 + $0x128] sm:$0xff] }
  0x1e   :  { %2266 = vmatpush3.bf16.msra.mxu1 %v2852_v63  ;;  %v329_v12 = vld [vmem:[%s3348_s6 + $0x100] sm:$0xff]  ;;  %v336_v31 = vld [vmem:[%s3348_s6 + $0x138] sm:$0xff]  ;;  %v338_v36 = vld [vmem:[%s3348_s6 + $0x148] sm:$0xff] }
  0x1f   :  { %2268 = vmatprep.subr.bf16.mxu1 %v2857_v2  ;;  %2318 = vmatpush3.bf16.msra.mxu0 %v2317_v25  ;;  %v340_v39 = vld [vmem:[%s3348_s6 + $0x158] sm:$0xff]  ;;  %v342_v44 = vld [vmem:[%s3348_s6 + $0x168] sm:$0xff]  ;;  %v674_v54 = vld [vmem:[%s3349_s7 + $0x40] sm:$0xff] }
  0x20   :  { %2320 = vmatprep.subr.bf16.mxu0 %v2319_v30  ;;  %v344_v47 = vld [vmem:[%s3348_s6 + $0x178] sm:$0xff]  ;;  %v675_v55 = vld [vmem:[%s3349_s7 + $0x48] sm:$0xff]  ;;  %v505_v61 = vld [vmem:[%s3346_s4] sm:$0x3f] }
  0x21   :  { %v2423_v58 = vpack.c.bf16 %v675_v55, %v674_v54  ;;  %v3145_v54 = vld [vmem:[%s3347_s5] sm:$0xff]  ;;  %vm3257_vm14 = vmpackc.low %vm682_vm8, %vm682_vm8 }
  0x22   :  { %2270 = vmatpush3.bf16.msra.mxu1 %v2880_v14 }
  0x23   :  { %2272 = vmatprep.subr.bf16.mxu1 %v2693_v8  ;;  %2322 = vmatpush3.bf16.msra.mxu0 %v2321_v33 }
  0x24   :  { %2324 = vmatprep.subr.bf16.mxu0 %v2323_v38 }
  0x27   :  { %2326 = vmatpush3.bf16.msra.mxu0 %v2325_v43 }
  0x28   :  { %2328 = vmatprep.subr.bf16.mxu0 %v2327_v46 }
  0x2b   :  { %2330 = vmatpush3.bf16.msra.mxu0 %v2329_v50 }
  0x2c   :  { %2332 = vmatprep.subr.bf16.mxu0 %v2331_v56 }
  0x2f   :  { %2334 = vmatpush3.bf16.msra.mxu0 %v2333_v59 }
  0x30   :  { %2368 = vmatprep.subr.bf16.mxu0 %v2807_v48  ;;  %v2964_v48 = vld [vmem:[%s3344_s2] sm:$0x3] }
  0x31   :  { %v179_v5 = vrot.slane %v2964_v48, %v2718_v17  ;;  %v186_v6 = vrot.slane %v2964_v48, %v2721_v18 }
  0x32   :  { %420 = vmatmul.mubr.f32.vlgmr.msra.gmra.mrb[0].mxu0 %v345_v62 }
  0x33   :  { %424 = vmatprep.mubr.f32.mxu0 %v349_v3  ;;  %2370 = vmatpush3.bf16.msra.mxu0 %v2818_v52  ;;  %v2971_v52 = vand.u32 127, %v72_v0 }
  0x34   :  { %2372 = vmatprep.subr.bf16.mxu0 %v2843_v60  ;;  %181 = vbcast.lane.b32.xlu1 %v179_v5, 256  ;;  %v677_v5 = vld [vmem:[%s3349_s7 + $0x58] sm:$0xff] }
  0x35   :  { %v74_v60 = vadd.s32 128, %v2971_v52 }
  0x36   :  { %425 = vmatmul.mubr.f32.gmra.mrb[2].mxu0 %v348_v4  ;;  %v676_v4 = vld [vmem:[%s3349_s7 + $0x50] sm:$0xff] }
  0x37   :  { %2374 = vmatpush3.bf16.msra.mxu0 %v2854_v1 }
  0x38   :  { %2376 = vmatprep.subr.bf16.mxu0 %v2311_v10  ;;  %188 = vbcast.lane.b32.xlu1 %v186_v6, 256 }
  0x3b   :  { %2378 = vmatpush3.bf16.msra.mxu0 %v2313_v15  ;;  %v330_v15 = vld [vmem:[%s3348_s6 + $0x108] sm:$0xff] }
  0x3c   :  { %2380 = vmatprep.subr.bf16.mxu0 %v2315_v21  ;;  %v2996_v16 = vpack.c.bf16 %v330_v15, %v329_v12  ;;  %v332_v21 = vld [vmem:[%s3348_s6 + $0x118] sm:$0xff] }
  0x3d   :  { %v3007_v23 = vpack.c.bf16 %v332_v21, %v331_v20  ;;  %v680_v21 = vld [vmem:[%s3349_s7 + $0x70] sm:$0xff] }
  0x3f   :  { %2382 = vmatpush3.bf16.msra.mxu0 %v2317_v25  ;;  %v333_v25 = vld [vmem:[%s3348_s6 + $0x120] sm:$0xff] }
  0x40   :  { %2384 = vmatprep.subr.bf16.mxu0 %v2319_v30  ;;  %v3020_v27 = vpack.c.bf16 %v334_v26, %v333_v25  ;;  %v335_v30 = vld [vmem:[%s3348_s6 + $0x130] sm:$0xff] }
  0x41   :  { %v3030_v32 = vpack.c.bf16 %v336_v31, %v335_v30  ;;  %v666_v31 = vld [vmem:[%s3349_s7] sm:$0xff] }
  0x43   :  { %2386 = vmatpush3.bf16.msra.mxu0 %v2321_v33  ;;  %v337_v33 = vld [vmem:[%s3348_s6 + $0x140] sm:$0xff] }
  0x44   :  { %2388 = vmatprep.subr.bf16.mxu0 %v2323_v38  ;;  %v3040_v37 = vpack.c.bf16 %v338_v36, %v337_v33  ;;  %v339_v38 = vld [vmem:[%s3348_s6 + $0x150] sm:$0xff]  ;;  %v667_v33 = vld [vmem:[%s3349_s7 + $0x8] sm:$0xff] }
  0x45   :  { %v3050_v42 = vpack.c.bf16 %v340_v39, %v339_v38  ;;  %v3112_v36 = vpack.c.bf16 %v667_v33, %v666_v31  ;;  %v2614_v38 = vmov 0.0|0.0   ;;  %v2616_v39 = vmov 0.0  }
  0x47   :  { %2390 = vmatpush3.bf16.msra.mxu0 %v2325_v43  ;;  %v341_v43 = vld [vmem:[%s3348_s6 + $0x160] sm:$0xff] }
  0x48   :  { %2392 = vmatprep.subr.bf16.mxu0 %v2327_v46  ;;  %v3060_v45 = vpack.c.bf16 %v342_v44, %v341_v43  ;;  %v343_v46 = vld [vmem:[%s3348_s6 + $0x170] sm:$0xff] }
  0x49   :  { %v3070_v49 = vpack.c.bf16 %v344_v47, %v343_v46 }
  0x4b   :  { %2394 = vmatpush3.bf16.msra.mxu0 %v2329_v50  ;;  %v350_v50 = vld [vmem:[%s3345_s3 + $0x28] sm:$0xff] }
  0x4c   :  { %2396 = vmatprep.subr.bf16.mxu0 %v2331_v56  ;;  %v2613_v56 = vmov 1983009808  }
  0x4d   :  { %v509_v57 = vunpack.c.l.s4 %v2613_v56 }
  0x4f   :  { %2398 = vmatpush3.bf16.msra.mxu0 %v2333_v59  ;;  %v510_v59 = vunpack.c.0.s8 %v509_v57 }
  0x50   :  { %2424 = vmatprep.subr.bf16.mxu0 %v2423_v58 }
  0x51   :  { %v513_v62 = vsub.s32 %v510_v59, %v2691_v7  ;;  %v668_v59 = vld [vmem:[%s3349_s7 + $0x10] sm:$0xff] }
  0x53   :  { %v514_v3 = vrot.slane %v505_v61, %v513_v62 }
  0x55   :  { %v522_v6 = vcombine.high %v514_v3, %v514_v3 }
  0x57   :  { %590 = vmatprep.mubr.f32.mxu0 %v522_v6 }
  0x58   :  { %591 = vmatmul.mubr.f32.vlgmr.msra.gmra.mrb[4].mxu0 %v514_v3 }
  0x59   :  { %2426 = vmatpush3.bf16.msra.mxu0 %v2423_v58 }
  0x7a   :  { %v81_v1 = vpop.permute.xlu0 %80  ;;  %v88_v10 = vpop.permute.xlu1 %87 }
  0x7b   :  { %vm89_vm0 = vcmp.eq.s32.totalorder %v2971_v52, %v81_v1  ;;  %vm90_vm1 = vcmp.eq.s32.totalorder %v74_v60, %v81_v1  ;;  %vm92_vm2 = vcmp.eq.s32.totalorder %v74_v60, %v88_v10  ;;  %vm91_vm3 = vcmp.eq.s32.totalorder %v2971_v52, %v88_v10  ;;  %v678_v1 = vld [vmem:[%s3349_s7 + $0x60] sm:$0xff]  ;;  %v679_v10 = vld [vmem:[%s3349_s7 + $0x68] sm:$0xff] }
  0x7c   :  { %1758 = vmatprep.mubr.msk.f32.mxu1 %vm90_vm1, %v2612_v11 }
  0x7d   :  { %1759 = vmatmul.mubr.msk.f32.vlgmr.msra.gmra.mrb[0].mxu1 %vm89_vm0, %v2612_v11 }
  0x7e   :  { %2274 = vmatpush3.bf16.msra.mxu1 %v2695_v9  ;;  %1760 = vmatprep.mubr.msk.f32.mxu1 %vm92_vm2, %v2612_v11 }
  0x7f   :  { %2276 = vmatprep.subr.bf16.mxu1 %v2706_v13 }
  0x81   :  { %1761 = vmatmul.mubr.msk.f32.gmra.mrb[2].mxu1 %vm91_vm3, %v2612_v11 }
  0x82   :  { %2278 = vmatpush3.bf16.msra.mxu1 %v2725_v19 }
  0x83   :  { %2280 = vmatprep.subr.bf16.mxu1 %v2730_v22 }
  0x86   :  { %2282 = vmatpush3.bf16.msra.mxu1 %v2748_v28 }
  0x87   :  { %2284 = vmatprep.subr.bf16.mxu1 %v2751_v29 }
  0x8a   :  { %2286 = vmatpush3.bf16.msra.mxu1 %v2766_v34 }
  0x8b   :  { %2288 = vmatprep.subr.bf16.mxu1 %v2769_v35  ;;  %v195_v0 = vpop.permute.xlu0 %194 }
  0x8c   :  { %vm197_vm4 = vcmp.eq.s32.totalorder %v74_v60, %v195_v0  ;;  %vm196_vm5 = vcmp.eq.s32.totalorder %v2971_v52, %v195_v0  ;;  %v2427_v60 = vpack.c.bf16 %v677_v5, %v676_v4 }
  0x8d   :  { %1764 = vmatprep.mubr.msk.f32.mxu1 %vm197_vm4, %v2612_v11 }
  0x8e   :  { %2290 = vmatpush3.bf16.msra.mxu1 %v2784_v40  ;;  %2428 = vmatprep.subr.bf16.mxu0 %v2427_v60 }
  0x8f   :  { %2292 = vmatprep.subr.bf16.mxu1 %v2787_v41  ;;  %2430 = vmatpush3.bf16.msra.mxu0 %v2427_v60 }
  0x92   :  { %2294 = vmatpush3.bf16.msra.mxu1 %v2816_v51 }
  0x93   :  { %2296 = vmatprep.subr.bf16.mxu1 %v2821_v53 }
  0x96   :  { %2298 = vmatpush3.bf16.msra.mxu1 %v2852_v63 }
  0x97   :  { %2300 = vmatprep.subr.bf16.mxu1 %v2857_v2 }
  0x9a   :  { %2302 = vmatpush3.bf16.msra.mxu1 %v2880_v14 }
  0x9b   :  { %2336 = vmatprep.subr.bf16.mxu1 %v2996_v16 }
  0x9d   :  { %1765 = vmatmul.mubr.msk.f32.vlgmr.msra.gmra.mrb[4].mxu1 %vm196_vm5, %v2612_v11  ;;  %v2431_v11 = vpack.c.bf16 %v679_v10, %v678_v1  ;;  %v670_v1 = vld [vmem:[%s3349_s7 + $0x20] sm:$0xff]  ;;  %v671_v10 = vld [vmem:[%s3349_s7 + $0x28] sm:$0xff] }
  0x9e   :  { %2338 = vmatpush3.bf16.msra.mxu1 %v2996_v16  ;;  %2105 = vmatprep.mubr.f32.mxu1 %v347_v24  ;;  %v681_v24 = vld [vmem:[%s3349_s7 + $0x78] sm:$0xff] }
  0x9f   :  { %2340 = vmatprep.subr.bf16.mxu1 %v3007_v23  ;;  %2432 = vmatprep.subr.bf16.mxu0 %v2431_v11  ;;  %v2435_v26 = vpack.c.bf16 %v681_v24, %v680_v21 }
  0xa0   :  { %2434 = vmatpush3.bf16.msra.mxu0 %v2431_v11 }
  0xa1   :  { %2436 = vmatprep.subr.bf16.mxu0 %v2435_v26 }
  0xa2   :  { %2342 = vmatpush3.bf16.msra.mxu1 %v3007_v23 }
  0xa3   :  { %2344 = vmatprep.subr.bf16.mxu1 %v3020_v27 }
  0xa4   :  { %2438 = vmatpush3.bf16.msra.mxu0 %v2435_v26 }
  0xa5   :  { %2440 = vmatprep.subr.bf16.mxu0 %v3112_v36 }
  0xa6   :  { %2346 = vmatpush3.bf16.msra.mxu1 %v3020_v27 }
  0xa7   :  { %2348 = vmatprep.subr.bf16.mxu1 %v3030_v32 }
  0xaa   :  { %2350 = vmatpush3.bf16.msra.mxu1 %v3030_v32 }
  0xab   :  { %2352 = vmatprep.subr.bf16.mxu1 %v3040_v37 }
  0xae   :  { %2354 = vmatpush3.bf16.msra.mxu1 %v3040_v37 }
  0xaf   :  { %2356 = vmatprep.subr.bf16.mxu1 %v3050_v42 }
  0xb2   :  { %2358 = vmatpush3.bf16.msra.mxu1 %v3050_v42 }
  0xb3   :  { %2360 = vmatprep.subr.bf16.mxu1 %v3060_v45 }
  0xb6   :  { %2362 = vmatpush3.bf16.msra.mxu1 %v3060_v45 }
  0xb7   :  { %2364 = vmatprep.subr.bf16.mxu1 %v3070_v49 }
  0xba   :  { %2366 = vmatpush3.bf16.msra.mxu1 %v3070_v49 }
  0xbb   :  { %2399 = vmatprep.subr.bf16.mxu1 %v2614_v38 }
  0xbd   :  { %2106 = vmatmul.mubr.f32.vlgmr.msra.gmra.mrb[6].mxu1 %v350_v50  ;;  %v353_v50 = vsub.s32 4, %v2691_v7 }
  0xbe   :  { %2401 = vmatpush3.bf16.msra.mxu1 %v2996_v16  ;;  %2140 = vmatprep.mubr.msk.f32.mxu1 %vm2615_vm6, %v2616_v39  ;;  %v507_v16 = vcombine.high %v505_v61, %v505_v61  ;;  %v669_v61 = vld [vmem:[%s3349_s7 + $0x18] sm:$0xff] }
  0xbf   :  { %2402 = vmatprep.subr.bf16.mxu1 %v2614_v38  ;;  %v354_v55 = vrot.slane %v3145_v54, %v353_v50  ;;  %v2443_v6 = vpack.c.bf16 %v669_v61, %v668_v59  ;;  %v289_v50 = vsub.s32 6, %v2691_v7 }
  0xc2   :  { %2404 = vmatpush3.bf16.msra.mxu1 %v3007_v23  ;;  %v521_v23 = vrot.slane %v507_v16, %v513_v62  ;;  %v182_v62 = vpop.permute.xlu1 %181 }
  0xc3   :  { %2405 = vmatprep.subr.bf16.mxu1 %v2614_v38 }
  0xc6   :  { %2407 = vmatpush3.bf16.msra.mxu1 %v3020_v27 }
  0xc7   :  { %2408 = vmatprep.subr.bf16.mxu1 %v2614_v38 }
  0xca   :  { %2410 = vmatpush3.bf16.msra.mxu1 %v3030_v32 }
  0xcb   :  { %2411 = vmatprep.subr.bf16.mxu1 %v2614_v38 }
  0xce   :  { %2413 = vmatpush3.bf16.msra.mxu1 %v3040_v37 }
  0xcf   :  { %2414 = vmatprep.subr.bf16.mxu1 %v2614_v38 }
  0xd2   :  { %2416 = vmatpush3.bf16.msra.mxu1 %v3050_v42 }
  0xd3   :  { %2417 = vmatprep.subr.bf16.mxu1 %v2614_v38 }
  0xd6   :  { %2419 = vmatpush3.bf16.msra.mxu1 %v3060_v45 }
  0xd7   :  { %2420 = vmatprep.subr.bf16.mxu1 %v2614_v38 }
  0xda   :  { %2422 = vmatpush3.bf16.msra.mxu1 %v3070_v49 }
  0xdb   :  { %2455 = vmatprep.subr.bf16.mxu1 %v2614_v38 }
  0xdd   :  { %2141 = vmatmul.mubr.f32.vlgmr.msra.gmra.mrb[8].mxu1 %v521_v23 }
  0xde   :  { %2457 = vmatpush3.bf16.msra.mxu1 %v2423_v58  ;;  %2197 = vmatprep.mubr.msk.f32.mxu1 %vm2615_vm6, %v2616_v39 }
  0xdf   :  { %2458 = vmatprep.subr.bf16.mxu1 %v2614_v38 }
  0xe2   :  { %2460 = vmatpush3.bf16.msra.mxu1 %v2427_v60 }
  0xe3   :  { %2461 = vmatprep.subr.bf16.mxu1 %v2614_v38 }
  0xe6   :  { %2463 = vmatpush3.bf16.msra.mxu1 %v2431_v11  ;;  %v2447_v11 = vpack.c.bf16 %v671_v10, %v670_v1  ;;  %v1149_v10 = vsub.f32 1.0, %v2964_v48 }
  0xe7   :  { %2464 = vmatprep.subr.bf16.mxu1 %v2614_v38 }
  0xea   :  { %2466 = vmatpush3.bf16.msra.mxu1 %v2435_v26 }
  0xeb   :  { %2467 = vmatprep.subr.bf16.mxu1 %v2614_v38 }
 0x105   :  { %v1917_v0 = vpop.f32.mrb[0].mxu0 }
 0x106   :  { %v1918_v12 = vpop.f32.mrb[1].mxu0 }
 0x107   :  { %v1919_v15 = vadd.f32 %v1918_v12, %v1917_v0  ;;  %v672_v0 = vld [vmem:[%s3349_s7 + $0x30] sm:$0xff]  ;;  %v673_v12 = vld [vmem:[%s3349_s7 + $0x38] sm:$0xff] }
 0x109   :  { %v1920_v20 = vpop.f32.mrb[2].mxu0  ;;  %v422_v57 = vadd.f32 %v1919_v15, %v354_v55  ;;  %v2451_v15 = vpack.c.bf16 %v673_v12, %v672_v0 }
 0x10a   :  { %v1921_v25 = vpop.f32.mrb[3].mxu0 }
 0x10b   :  { %v1922_v30 = vadd.f32 %v1921_v25, %v1920_v20  ;;  %v189_v20 = vpop.permute.xlu1 %188 }
 0x10d   :  { %v427_v56 = vadd.f32 %v1922_v30, %v354_v55 }
 0x12b   :  { %v1973_v24 = vpop.f32.mrb[4].mxu0 }
 0x12c   :  { %v1974_v25 = vpop.f32.mrb[5].mxu0 }
 0x12d   :  { %v1975_v26 = vadd.f32 %v1974_v25, %v1973_v24 }
 0x12f   :  { %v593_v23 = vadd.f32 %v1975_v26, %v354_v55  ;;  %v294_v55 = vsub.s32 7, %v2691_v7 }
 0x131   :  { %v295_v59 = vrot.slane %v3145_v54, %v294_v55 }
 0x150   :  { %v1844_v27 = vpop.f32.mrb[0].mxu1 }
 0x151   :  { %v1845_v32 = vpop.f32.mrb[1].mxu1 }
 0x152   :  { %v1846_v37 = vadd.f32 %v1845_v32, %v1844_v27 }
 0x154   :  { %v1847_v42 = vpop.f32.mrb[2].mxu1  ;;  %v190_v60 = vmul.f32 %v1846_v37, %v182_v62 }
 0x155   :  { %v1848_v43 = vpop.f32.mrb[3].mxu1 }
 0x156   :  { %v1849_v44 = vadd.f32 %v1848_v43, %v1847_v42  ;;  %v847_v43 = vsub.s32 5, %v2691_v7 }
 0x158   :  { %v191_v21 = vmul.f32 %v1849_v44, %v189_v20  ;;  %v3185_v44 = vrot.slane %v3145_v54, %v847_v43 }
 0x170   :  { %v1882_v45 = vpop.f32.mrb[4].mxu1 }
 0x171   :  { %v1883_v46 = vpop.f32.mrb[5].mxu1 }
 0x172   :  { %v1884_v47 = vadd.f32 %v1883_v46, %v1882_v45 }
 0x174   :  { %v273_v49 = vsel %vm272_vm7, %v1884_v47, 0.0 }
 0x175   :  { %274 = vadd.xlane.f32.xlu0 %v273_v49 }
 0x190   :  { %v2107_v58 = vpop.f32.mrb[6].mxu1 }
 0x191   :  { %v502_v3 = vadd.f32 %v2107_v58, %v427_v56  ;;  %v496_v4 = vpop.f32.mrb[7].mxu1  ;;  %v290_v56 = vrot.slane %v3145_v54, %v289_v50 }
 0x192   :  { %v497_v5 = vadd.f32 %v496_v4, %v422_v57 }
 0x194   :  { %2159 = vmatprep.mubr.msk.f32.mxu0 %vm682_vm8, %v497_v5 }
 0x195   :  { %2160 = vmatmul.mubr.msk.f32.vlgmr.msra.gmra.mrb[6].mxu0 %vm682_vm8, %v502_v3 }
 0x196   :  { %2442 = vmatpush3.bf16.msra.mxu0 %v3112_v36  ;;  %2178 = vmatprep.mubr.msk.f32.mxu0 %vm682_vm8, %v190_v60 }
 0x197   :  { %2444 = vmatprep.subr.bf16.mxu0 %v2443_v6 }
 0x19a   :  { %2446 = vmatpush3.bf16.msra.mxu0 %v2443_v6 }
 0x19b   :  { %2448 = vmatprep.subr.bf16.mxu0 %v2447_v11 }
 0x19e   :  { %2450 = vmatpush3.bf16.msra.mxu0 %v2447_v11 }
 0x19f   :  { %2452 = vmatprep.subr.bf16.mxu0 %v2451_v15 }
 0x1a2   :  { %2454 = vmatpush3.bf16.msra.mxu0 %v2451_v15 }
 0x1a3   :  { %2219 = vmatprep.subr.mxu0 %v2616_v39 }
 0x1a5   :  { %2179 = vmatmul.mubr.msk.f32.vlgmr.msra.gmra.mrb[6].mxu0 %vm682_vm8, %v191_v21 }
 0x1a6   :  { %2221 = vmatprep.mubr.msk.f32.mxu0 %vm2615_vm6, %v2616_v39 }
 0x1b0   :  { %v662_v32 = vpop.f32.mrb[8].mxu1 }
 0x1b1   :  { %v663_v37 = vadd.f32 %v662_v32, %v593_v23  ;;  %v2142_v42 = vpop.f32.mrb[9].mxu1 }
 0x1b3   :  { %2198 = vmatmul.mubr.msk.f32.vlgmr.msra.gmra.mrb[10].mxu1 %vm682_vm8, %v663_v37 }
 0x1b4   :  { %2469 = vmatpush3.bf16.msra.mxu1 %v3112_v36  ;;  %2216 = vmatprep.mubr.msk.f32.mxu1 %vm2615_vm6, %v2616_v39 }
 0x1b5   :  { %2470 = vmatprep.subr.bf16.mxu1 %v2614_v38 }
 0x1b8   :  { %2472 = vmatpush3.bf16.msra.mxu1 %v2443_v6  ;;  %v2617_v6 = vmov 1966171168  }
 0x1b9   :  { %2473 = vmatprep.subr.bf16.mxu1 %v2614_v38  ;;  %v1152_v60 = vunpack.c.l.s4 %v2617_v6 }
 0x1bb   :  { %v1153_v1 = vunpack.c.0.s8 %v1152_v60 }
 0x1bc   :  { %2475 = vmatpush3.bf16.msra.mxu1 %v2447_v11 }
 0x1bd   :  { %2476 = vmatprep.subr.bf16.mxu1 %v2614_v38  ;;  %v3210_v11 = vsub.s32 %v1153_v1, %v2691_v7 }
 0x1bf   :  { %v1157_v0 = vrot.slane %v1149_v10, %v3210_v11 }
 0x1c0   :  { %2478 = vmatpush3.bf16.msra.mxu1 %v2451_v15 }
 0x1c1   :  { %2224 = vmatprep.subr.mxu1 %v2616_v39  ;;  %v1165_v12 = vrot.slane %v1157_v0, %v3210_v11  ;;  %v1158_v26 = vcombine.high %v1157_v0, %v1157_v0 }
 0x1c3   :  { %v1175_v15 = vmul.f32 -1e+09, %v1165_v12  ;;  %v1172_v48 = vrot.slane %v1158_v26, %v3210_v11 }
 0x202   :  { %v275_v30 = vpop.xlane.xlu0 %274 }
 0x203   :  { %v277_v31 = vmul.f32 0.015625, %v275_v30  ;;  %v1176_v30 = vmul.f32 -1e+09, %v1172_v48 }
 0x205   :  { %v278_v33 = vsub.f32 %v1884_v47, %v277_v31  ;;  %v1186_v23 = vrot.slane %v1176_v30, %v2718_v17 }
 0x207   :  { %v279_v16 = vmul.f32 %v278_v33, %v278_v33 }
 0x209   :  { %v280_v27 = vsel %vm272_vm7, %v279_v16, 0.0 }
 0x20a   :  { %281 = vadd.xlane.f32.xlu1 %v280_v27 }
 0x278   :  { %v2180_v36 = vpop.f32.mrb[6].mxu0 }
 0x279   :  { %v836_v45 = vpop.f32.mrb[7].mxu0  ;;  %v850_v3 = vadd.f32 %v2180_v36, %v3185_v44 }
 0x27a   :  { %v849_v46 = vadd.f32 %v3185_v44, %v836_v45 }
 0x27c   :  { %2220 = vmatpush3.xpose.msk.msra.mxu0 %vm682_vm8, %v849_v46 }
 0x27d   :  { %2229 = vmatprep.subr.mxu0 %v2616_v39 }
 0x27f   :  { %2222 = vmatmul.mubr.msk.f32.vlgmr.msra.gmra.mrb[8].mxu0 %vm682_vm8, %v3145_v54 }
 0x280   :  { %2230 = vmatpush3.msra.mxu0 %v849_v46  ;;  %2231 = vmatprep.mubr.msk.f32.mxu0 %vm2615_vm6, %v2616_v39 }
 0x281   :  { %2481 = vmatprep.subr.msk.bf16.mxu0 %vm3257_vm14, %v2693_v8 }
 0x286   :  { %v920_v4 = vpop.f32.mrb[10].mxu1 }
 0x287   :  { %v2199_v5 = vpop.f32.mrb[11].mxu1 }
 0x297   :  { %v282_v38 = vpop.xlane.xlu1 %281 }
 0x298   :  { %v283_v47 = vmul.f32 0.015625, %v282_v38 }
 0x29a   :  { %v284_v49 = vadd.f32 1e-05, %v283_v47 }
 0x29c   :  { %2541 = vrsqrt.f32 %v284_v49 }
 0x2a6   :  { %v2542_v57 = vpop.eup %2541 }
 0x2a7   :  { %v286_v58 = vmul.f32 %v2542_v57, %v278_v33 }
 0x2a9   :  { %v291_v61 = vmul.f32 %v290_v56, %v286_v58 }
 0x2ab   :  { %v296_v62 = vadd.f32 %v295_v59, %v291_v61 }
 0x2ad   :  { %2217 = vmatmul.mubr.msk.f32.vlgmr.msra.gmra.mrb[12].mxu1 %vm682_vm8, %v296_v62 }
 0x2ae   :  { %2225 = vmatpush3.xpose.msk.msra.mxu1 %vm682_vm8, %v850_v3  ;;  %2226 = vmatprep.mubr.msk.f32.mxu1 %vm2615_vm6, %v2616_v39 }
 0x2af   :  { %2234 = vmatprep.subr.mxu1 %v2616_v39 }
 0x2b1   :  { %2227 = vmatmul.mubr.msk.f32.vlgmr.msra.gmra.mrb[14].mxu1 %vm682_vm8, %v3145_v54  ;;  %v1182_v54 = vrot.slane %v1175_v15, %v2718_v17 }
 0x2b2   :  { %2235 = vmatpush3.msra.mxu1 %v850_v3  ;;  %2236 = vmatprep.mubr.msk.f32.mxu1 %vm2615_vm6, %v2616_v39 }
 0x352   :  { %v1070_v20 = vpop.f32.mrb[8].mxu0 }
 0x353   :  { %v1147_v21 = vmul.f32 0.125, %v1070_v20  ;;  %v2223_v39 = vpop.f32.mrb[9].mxu0 }
 0x355   :  { %v1189_v24 = vadd.f32 %v1182_v54, %v1147_v21 }
 0x357   :  { %v1192_v25 = vsel %vm1191_vm9, %v1189_v24, -inf }
 0x358   :  { %1193 = vmax.xlane.f32.xlu0 %v1192_v25 }
 0x380   :  { %v993_v31 = vpop.f32.mrb[12].mxu1 }
 0x381   :  { %v994_v33 = vadd.f32 %v993_v31, %v920_v4  ;;  %v2218_v16 = vpop.f32.mrb[13].mxu1 }
 0x384   :  { %v1143_v27 = vpop.f32.mrb[14].mxu1 }
 0x385   :  { %v1148_v32 = vmul.f32 0.125, %v1143_v27  ;;  %v2228_v37 = vpop.f32.mrb[15].mxu1  ;;  %v69_v27 = vld [vmem:[%s3347_s5 + $0x8] sm:$0x3]  ;;  %s2618_s5 = smov [#allocation2]  }
 0x386   :  { %v1391_v37 = vrot.slane %v69_v27, %v2718_v17  ;;  %s1732_s8 = sshll.u32 %s2618_s5, 4  ;;  %s1733_s8 = int_to_ptr.vmem [resolvable:$true] %s1732_s8 }
 0x387   :  { %v1190_v42 = vadd.f32 %v1186_v23, %v1148_v32  ;;  %v997_v23 = vadd.f32 %v994_v33, %v3185_v44  ;;  %s2563_s18 = scalar_lea.vmem %s1733_s8, 128  ;;  %p2568_p1 = scmp.lt.s32.totalorder %s1733_s8, %s1733_s8 }
 0x388   :  { %p2564_p0 = scmp.ne.s32.totalorder %s1733_s8, %s2563_s18  ;;  %p2569_p2 = scmp.lt.s32.totalorder %s2563_s18, %s2563_s18 }
 0x389   :  { %v1195_v43 = vsel %vm1191_vm9, %v1190_v42, -inf  ;;  %v1412_v32 = vrot.slane %v997_v23, %v3210_v11 }
 0x38a   :  { %1196 = vmax.xlane.f32.xlu0 %v1195_v43  ;;  %p2570_p3 = por %p2569_p2, %p2568_p1 }
 0x38c   :  { %p2571_p4 = pnand %p2570_p3, %p2564_p0 }
 0x3e5   :  { %v1194_v36 = vpop.xlane.xlu0 %1193 }
 0x3e6   :  { %v1198_v45 = vsub.f32 %v1189_v24, %v1194_v36  ;;  %v1397_v36 = vrot.slane %v69_v27, %v2721_v18 }
 0x3e8   :  { %v1200_v46 = vmul.f32 1.442695, %v1198_v45  ;;  %v1420_v45 = vrot.slane %v1412_v32, %v3210_v11 }
 0x3ea   :  { %2543 = vpow2.f32 %v1200_v46 }
 0x3f4   :  { %v2544_v38 = vpop.eup %2543 }
 0x3f5   :  { %v1204_v47 = vsel %vm1191_vm9, %v2544_v38, 0.0 }
 0x3f6   :  { %1205 = vadd.xlane.f32.xlu1 %v1204_v47  ;;  %v1431_v47 = vrot.slane %v1420_v45, %v2718_v17 }
 0x417   :  { %v1197_v49 = vpop.xlane.xlu0 %1196 }
 0x418   :  { %v1199_v50 = vsub.f32 %v1190_v42, %v1197_v49 }
 0x41a   :  { %v1202_v55 = vmul.f32 1.442695, %v1199_v50 }
 0x41c   :  { %2545 = vpow2.f32 %v1202_v55 }
 0x426   :  { %v2546_v56 = vpop.eup %2545 }
 0x427   :  { %v1207_v57 = vsel %vm1191_vm9, %v2546_v56, 0.0 }
 0x428   :  { %1208 = vadd.xlane.f32.xlu0 %v1207_v57 }
 0x483   :  { %v1206_v58 = vpop.xlane.xlu1 %1205 }
 0x484   :  { %2547 = vrcp.f32 %v1206_v58 }
 0x48e   :  { %v2548_v59 = vpop.eup %2547 }
 0x48f   :  { %v1212_v61 = vmul.f32 %v2548_v59, %v2544_v38 }
 0x491   :  { %2232 = vmatmul.mubr.msk.f32.vlgmr.msra.gmra.mrb[10].mxu0 %vm1214_vm10, %v1212_v61 }
 0x492   :  { %2484 = vmatpush3.bf16.xpose.msk.msra.mxu0 %vm3257_vm14, %v2695_v9 }
 0x493   :  { %2487 = vmatprep.subr.msk.bf16.mxu0 %vm3257_vm14, %v2706_v13 }
 0x49a   :  { %2490 = vmatpush3.bf16.xpose.msk.msra.mxu0 %vm3257_vm14, %v2725_v19 }
 0x49b   :  { %2493 = vmatprep.subr.msk.bf16.mxu0 %vm3257_vm14, %v2730_v22 }
 0x4a2   :  { %2496 = vmatpush3.bf16.xpose.msk.msra.mxu0 %vm3257_vm14, %v2748_v28 }
 0x4a3   :  { %2499 = vmatprep.subr.msk.bf16.mxu0 %vm3257_vm14, %v2751_v29 }
 0x4aa   :  { %2502 = vmatpush3.bf16.xpose.msk.msra.mxu0 %vm3257_vm14, %v2766_v34 }
 0x4ab   :  { %2505 = vmatprep.subr.msk.bf16.mxu0 %vm3257_vm14, %v2769_v35 }
 0x4b2   :  { %2508 = vmatpush3.bf16.xpose.msk.msra.mxu0 %vm3257_vm14, %v2784_v40 }
 0x4b3   :  { %2511 = vmatprep.subr.msk.bf16.mxu0 %vm3257_vm14, %v2787_v41 }
 0x4b5   :  { %v1209_v62 = vpop.xlane.xlu0 %1208 }
 0x4b6   :  { %2549 = vrcp.f32 %v1209_v62 }
 0x4ba   :  { %2514 = vmatpush3.bf16.xpose.msk.msra.mxu0 %vm3257_vm14, %v2816_v51 }
 0x4bb   :  { %2517 = vmatprep.subr.msk.bf16.mxu0 %vm3257_vm14, %v2821_v53 }
 0x4c0   :  { %v2550_v3 = vpop.eup %2549 }
 0x4c1   :  { %v1213_v4 = vmul.f32 %v2550_v3, %v2546_v56  ;;  %v1413_v56 = vcombine.high %v1412_v32, %v1412_v32 }
 0x4c2   :  { %2520 = vmatpush3.bf16.xpose.msk.msra.mxu0 %vm3257_vm14, %v2852_v63 }
 0x4c3   :  { %2237 = vmatmul.mubr.msk.f32.vlgmr.msra.gmra.mrb[16].mxu1 %vm1214_vm10, %v1213_v4  ;;  %v1427_v59 = vrot.slane %v1413_v56, %v3210_v11  ;;  %2523 = vmatprep.subr.msk.bf16.mxu0 %vm3257_vm14, %v2857_v2 }
 0x4c5   :  { %v1435_v3 = vrot.slane %v1427_v59, %v2718_v17 }
 0x4ca   :  { %2526 = vmatpush3.bf16.xpose.msk.msra.mxu0 %vm3257_vm14, %v2880_v14 }
 0x564   :  { %v1284_v5 = vpop.f32.mrb[10].mxu0 }
 0x565   :  { %v2233_v6 = vpop.f32.mrb[11].mxu0  ;;  %v1362_v60 = vsel %vm1361_vm11, %v1284_v5, 0.0 }
 0x566   :  { %1363 = vadd.xlane.f32.xlu1 %v1362_v60  ;;  %v1450_v60 = vsub.s32 %v2971_v52, %v2691_v7 }
 0x596   :  { %v1357_v1 = vpop.f32.mrb[16].mxu1 }
 0x597   :  { %v2238_v10 = vpop.f32.mrb[17].mxu1  ;;  %v1365_v0 = vsel %vm1361_vm11, %v1357_v1, 0.0 }
 0x598   :  { %1366 = vadd.xlane.f32.xlu0 %v1365_v0 }
 0x5f3   :  { %v1364_v12 = vpop.xlane.xlu1 %1363 }
 0x5f4   :  { %v1368_v15 = vmul.f32 0.015625, %v1364_v12 }
 0x5f6   :  { %v1370_v54 = vsub.f32 %v1284_v5, %v1368_v15 }
 0x5f8   :  { %v1372_v20 = vmul.f32 %v1370_v54, %v1370_v54 }
 0x5fa   :  { %v1374_v21 = vsel %vm1361_vm11, %v1372_v20, 0.0 }
 0x5fb   :  { %1375 = vadd.xlane.f32.xlu1 %v1374_v21 }
 0x625   :  { %v1367_v39 = vpop.xlane.xlu0 %1366 }
 0x626   :  { %v1369_v24 = vmul.f32 0.015625, %v1367_v39 }
 0x628   :  { %v1371_v25 = vsub.f32 %v1357_v1, %v1369_v24 }
 0x62a   :  { %v1373_v26 = vmul.f32 %v1371_v25, %v1371_v25 }
 0x62c   :  { %v1377_v48 = vsel %vm1361_vm11, %v1373_v26, 0.0 }
 0x62d   :  { %1378 = vadd.xlane.f32.xlu0 %v1377_v48 }
 0x688   :  { %v1376_v30 = vpop.xlane.xlu1 %1375 }
 0x689   :  { %v1380_v31 = vmul.f32 0.015625, %v1376_v30 }
 0x68b   :  { %v1382_v16 = vadd.f32 1e-05, %v1380_v31 }
 0x68d   :  { %2551 = vrsqrt.f32 %v1382_v16 }
 0x697   :  { %v2552_v42 = vpop.eup %2551 }
 0x698   :  { %v1386_v43 = vmul.f32 %v2552_v42, %v1370_v54 }
 0x69a   :  { %v1392_v46 = vmul.f32 %v1391_v37, %v1386_v43 }
 0x69c   :  { %v3233_v38 = vadd.f32 %v1397_v36, %v1392_v46 }
 0x69e   :  { %v1438_v44 = vmul.f32 %v1431_v47, %v3233_v38 }
 0x6a0   :  { %v1440_v33 = vsel %vm1361_vm11, %v1438_v44, 0.0 }
 0x6a1   :  { %1441 = vadd.xlane.f32.xlu1 %v1440_v33 }
 0x6ba   :  { %v1379_v49 = vpop.xlane.xlu0 %1378 }
 0x6bb   :  { %v1381_v50 = vmul.f32 0.015625, %v1379_v49 }
 0x6bd   :  { %v1383_v55 = vadd.f32 1e-05, %v1381_v50 }
 0x6bf   :  { %2553 = vrsqrt.f32 %v1383_v55 }
 0x6c9   :  { %v2554_v57 = vpop.eup %2553 }
 0x6ca   :  { %v1387_v58 = vmul.f32 %v2554_v57, %v1371_v25 }
 0x6cc   :  { %v1393_v61 = vmul.f32 %v1391_v37, %v1387_v58 }
 0x6ce   :  { %v3239_v62 = vadd.f32 %v1397_v36, %v1393_v61 }
 0x6d0   :  { %v1439_v4 = vmul.f32 %v1435_v3, %v3239_v62  ;;  %v1402_v5 = vcombine.low %v3233_v38, %v3239_v62 }
 0x6d2   :  { %v1443_v6 = vsel %vm1361_vm11, %v1439_v4, 0.0  ;;  %1404 = vst.msk [vmem:[#allocation2] sm:$0xff] %vm682_vm8, %v1402_v5 }
 0x6d3   :  { %1444 = vadd.xlane.f32.xlu0 %v1443_v6 }
 0x72e   :  { %v1442_v1 = vpop.xlane.xlu1 %1441 }
 0x72f   :  { %v1451_v10 = vrot.slane %v1442_v1, %v1450_v60 }
 0x760   :  { %v1445_v11 = vpop.xlane.xlu0 %1444 }
 0x761   :  { %v1455_v0 = vrot.slane %v1445_v11, %v1450_v60 }
 0x763   :  { %v1457_v12 = vsel %vm1456_vm12, %v1455_v0, %v1451_v10 }
 0x764   :  { %v1460_v15 = vsel %vm1459_vm13, %v1457_v12, -inf }
 0x765   :  { %1461 = vmax.xlane.f32.xlu1 %v1460_v15 }
 0x7f2   :  { %v1462_v54 = vpop.xlane.xlu1 %1461 }
 0x7f3   :  { %v1467_v20 = vrot.slane %v1462_v54, %v2718_v17  ;;  %v1471_v21 = vrot.slane %v1462_v54, %v2721_v18 }
 0x7f5   :  { %v1474_v39 = vsub.f32 %v1442_v1, %v1467_v20  ;;  %v1475_v24 = vsub.f32 %v1445_v11, %v1471_v21 }
 0x7f7   :  { %v1476_v25 = vmul.f32 1.442695, %v1474_v39  ;;  %v1478_v7 = vmul.f32 1.442695, %v1475_v24 }
 0x7f9   :  { %2555 = vpow2.f32 %v1476_v25 }
 0x7fa   :  { %2557 = vpow2.f32 %v1478_v7 }
 0x803   :  { %v2556_v52 = vpop.eup %2555 }
 0x804   :  { %v2558_v26 = vpop.eup %2557  ;;  %1483 = vperm.xlu0 %2538, %v2556_v52  }
 0x805   :  { %1486 = vperm.xlu1 %2539, %v2558_v26  }
 0x883   :  { %v1484_v48 = vpop.permute.xlu0 %1483 }
 0x884   :  { %v1487_v30 = vpop.permute.xlu1 %1486  ;;  %v1491_v31 = vrot.slane %v1484_v48, %v1450_v60 }
 0x885   :  { %v1495_v16 = vrot.slane %v1487_v30, %v1450_v60 }
 0x887   :  { %v1496_v23 = vsel %vm1456_vm12, %v1495_v16, %v1491_v31 }
 0x888   :  { %v1498_v27 = vsel %vm1459_vm13, %v1496_v23, 0.0 }
 0x889   :  { %1499 = vadd.xlane.f32.xlu1 %v1498_v27 }
 0x916   :  { %v1500_v8 = vpop.xlane.xlu1 %1499 }
 0x917   :  { %v1505_v9 = vrot.slane %v1500_v8, %v2718_v17  ;;  %v1509_v13 = vrot.slane %v1500_v8, %v2721_v18 }
 0x919   :  { %2559 = vrcp.f32 %v1505_v9 }
 0x91a   :  { %2561 = vrcp.f32 %v1509_v13 }
 0x923   :  { %v2560_v19 = vpop.eup %2559 }
 0x924   :  { %v1513_v22 = vmul.f32 %v2560_v19, %v2556_v52  ;;  %v2562_v28 = vpop.eup %2561 }
 0x925   :  { %v1515_v29 = vmul.f32 %v2562_v28, %v2558_v26 }
 0x926   :  { %1518 = vperm.xlu0 %2538, %v1513_v22  }
 0x92a   :  { %1523 = vperm.xlu0 %2538, %v1515_v29  }
 0x9a5   :  { %v1519_v34 = vpop.permute.xlu0 %1518 }
 0x9a6   :  { %v1526_v35 = vmul.f32 %v1519_v34, %v3233_v38 }
 0x9a8   :  { %v1528_v40 = vsel %vm1361_vm11, %v1526_v35, 0.0 }
 0x9a9   :  { %v1529_v41 = vrot.slane %v1528_v40, 4  ;;  %v1524_v51 = vpop.permute.xlu0 %1523 }
 0x9aa   :  { %v1527_v53 = vmul.f32 %v1524_v51, %v3239_v62 }
 0x9ab   :  { %v1530_v17 = vadd.f32 %v1529_v41, %v1528_v40 }
 0x9ac   :  { %v1535_v18 = vsel %vm1361_vm11, %v1527_v53, 0.0 }
 0x9ad   :  { %v1531_v63 = vrot.slane %v1530_v17, 2  ;;  %v1536_v2 = vrot.slane %v1535_v18, 4 }
 0x9af   :  { %v1532_v14 = vadd.f32 %v1531_v63, %v1530_v17  ;;  %v1537_v37 = vadd.f32 %v1536_v2, %v1535_v18 }
 0x9b1   :  { %v1538_v42 = vrot.slane %v1537_v37, 2  ;;  %v1533_v43 = vrot.slane %v1532_v14, 1 }
 0x9b3   :  { %v1539_v36 = vadd.f32 %v1538_v42, %v1537_v37  ;;  %v1534_v46 = vadd.f32 %v1533_v43, %v1532_v14 }
 0x9b5   :  { %v1540_v45 = vrot.slane %v1539_v36, 1 }
 0x9b7   :  { %v1541_v47 = vadd.f32 %v1540_v45, %v1539_v36 }
 0x9b9   :  { %v1544_v38 = vsel %vm1456_vm12, %v1541_v47, %v1534_v46 }
 0x9ba   :  { %2071 = vmatprep.mubr.msk.f32.mxu0 %vm682_vm8, %v1544_v38 }
 0x9bb   :  { %2072 = vmatmul.mubr.msk.f32.vlgmr.msra.gmra.mrb[12].mxu0 %vm682_vm8, %v1544_v38 }
 0x9bc   :  { %2574 = shalt.err (!%p2571_p4)
}
 0x9bd   :  { %s2575_s20 = scalar_lea.hbm %s3351_s9, 128 }
 0x9be   :  { %p2576_p5 = scmp.ne.s32.totalorder %s3351_s9, %s2575_s20  ;;  %p2579_p6 = scmp.lt.u32.totalorder %s2575_s20, %s3351_s9 }
 0x9c0   :  { %p2581_p7 = pnand %p2579_p6, %p2576_p5 }
 0x9c2   :  { %2584 = shalt.err (!%p2581_p7)
}
 0x9c3   :  { %1735 = dma.vmem_to_hbm [thread:$0]  %s1733_s8, 128, %s3351_s9, [#allocation3]  }
 0x9c4   :  { %s2619_s25 = smov [#allocation4]  }
 0x9c5   :  { %s1742_s26 = sshll.u32 %s2619_s25, 4  ;;  %s1743_s26 = int_to_ptr.vmem [resolvable:$true] %s1742_s26 }
 0x9c6   :  { %s2585_s27 = scalar_lea.vmem %s1743_s26, 64  ;;  %p2590_p9 = scmp.lt.s32.totalorder %s1743_s26, %s1743_s26 }
 0x9c7   :  { %p2586_p8 = scmp.ne.s32.totalorder %s1743_s26, %s2585_s27  ;;  %p2591_p10 = scmp.lt.s32.totalorder %s2585_s27, %s2585_s27 }
 0x9c9   :  { %p2592_p11 = por %p2591_p10, %p2590_p9 }
 0x9cb   :  { %p2593_p12 = pnand %p2592_p11, %p2586_p8 }
 0xa8e   :  { %v1709_v44 = vpop.f32.mrb[12].mxu0 }
 0xa8f   :  { %v1711_v33 = vpop.f32.mrb[13].mxu0 }
 0xa90   :  { %v1716_v49 = vcombine.low %v1709_v44, %v1711_v33 }
 0xa92   :  { %1811 = vst.sshfl [vmem:[#allocation4] sm:$0x33 pattern:$0x76325410] %v1716_v49 }
 0xa93   :  { %2596 = shalt.err (!%p2593_p12)
}
 0xa94   :  { %s2597_s29 = scalar_lea.hbm %s3352_s10, 64 }
 0xa95   :  { %p2598_p13 = scmp.ne.s32.totalorder %s3352_s10, %s2597_s29  ;;  %p2601_p0 = scmp.lt.u32.totalorder %s2597_s29, %s3352_s10 }
 0xa97   :  { %p2603_p1 = pnand %p2601_p0, %p2598_p13 }
 0xa99   :  { %2606 = shalt.err (!%p2603_p1)
}
 0xa9a   :  { %1745 = dma.vmem_to_hbm [thread:$0]  %s1743_s26, 64, %s3352_s10, [#allocation5]  }
 0xa9b   :  { %2607 = dma.done.wait [#allocation3], 128  }
 0xa9c   :  { %2608 = vsyncadd [#allocation3], 4294967168 }
 0xa9d   :  { %2609 = dma.done.wait [#allocation5], 64  }
 0xa9e   :  { %2610 = vsyncadd [#allocation5], 4294967232 }
 0xa9f   :  { %1752 = vsyncpa [#allocation3], 1 }
 0xaa0   :  { %1753 = vsyncpa [#allocation5], 1 }

</bundles_post_ra>
